<compile_context>
chip_gen: v6e
topology: v6e:2x2x1
jax: 0.10.0
libtpu: 0.0.40
codegen_flags: <defaults>
</compile_context>

<pallas_src>
import functools

import jax
import jax.numpy as jnp
from jax.experimental import pallas as pl
from jax.experimental.pallas import tpu as pltpu

EPS = 1e-5  # nn.BatchNorm1d default eps

# Working-set budget (bytes) for the fused single-pass kernel. Conservative so
# it fits the 16 MiB default scoped VMEM on v5e with double buffering + temps.
_FUSED_VMEM_BUDGET = 10 * 1024 * 1024


def _fold_allreduce(v, r_fold, e_feat):
    """v: (1, r_fold*e_feat) per-column sums in row-folded lane layout.

    Returns per-feature totals broadcast back into the same folded layout:
      out[0, c] = sum_r v[0, (c - r*e_feat) mod (r_fold*e_feat)]
    Rolls execute on the XLU (separate VLIW slot), so this is nearly free.
    """
    total = v
    for r in range(1, r_fold):
        total = total + pltpu.roll(v, shift=r * e_feat, axis=1)
    return total


# ----------------------------------------------------------------------------
# Fused single-pass kernel: whole column (all rows) resident per feature tile.
# ----------------------------------------------------------------------------
def _fused_kernel(x1_ref, x2_ref, gamma_ref, beta_ref, o_ref, *,
                  n_total, r_fold, e_feat):
    x = x1_ref[...].astype(jnp.float32) + x2_ref[...].astype(jnp.float32)  # (Nw, tE)
    ones = jnp.ones((1, x.shape[0]), jnp.float32)

    # Column sums on the MXU (keeps the VPU slot free for the elementwise work).
    col_sum = jnp.dot(ones, x, preferred_element_type=jnp.float32)         # (1, tE)
    if r_fold > 1:
        col_sum = _fold_allreduce(col_sum, r_fold, e_feat)  # per-feature sums, folded
    mean = col_sum * (1.0 / n_total)

    centered = x - mean
    col_ss = jnp.dot(ones, centered * centered, preferred_element_type=jnp.float32)
    if r_fold > 1:
        col_ss = _fold_allreduce(col_ss, r_fold, e_feat)
    inv_std = jax.lax.rsqrt(col_ss * (1.0 / n_total) + EPS)                # biased var

    o_ref[...] = (centered * (inv_std * gamma_ref[...]) + beta_ref[...]).astype(o_ref.dtype)


# ----------------------------------------------------------------------------
# Two-pass path for large N: pass 1 = add + stats, pass 2 = affine normalize.
# ----------------------------------------------------------------------------
def _add_stats_kernel(x1_ref, x2_ref, added_ref, sum_ref, sumsq_ref, *, tn, n_rows):
    n_i = pl.program_id(1)
    x = x1_ref[...].astype(jnp.float32) + x2_ref[...].astype(jnp.float32)  # (tN, tE)
    added_ref[...] = x.astype(added_ref.dtype)

    if n_rows % tn != 0:
        # Mask rows past the true end so the partial last block doesn't pollute stats.
        row = jax.lax.broadcasted_iota(jnp.int32, (tn, 1), 0) + n_i * tn
        x = jnp.where(row < n_rows, x, 0.0)

    ones = jnp.ones((1, tn), jnp.float32)

    @pl.when(n_i == 0)
    def _():
        sum_ref[...] = jnp.zeros_like(sum_ref)
        sumsq_ref[...] = jnp.zeros_like(sumsq_ref)

    # MXU column reductions, accumulated in f32 across the N-tile grid axis.
    sum_ref[...] += jnp.dot(ones, x, preferred_element_type=jnp.float32)
    sumsq_ref[...] += jnp.dot(ones, x * x, preferred_element_type=jnp.float32)


def _affine_kernel(scale_ref, shift_ref, x_ref, o_ref):
    o_ref[...] = (x_ref[...].astype(jnp.float32) * scale_ref[...]
                  + shift_ref[...]).astype(o_ref.dtype)


def _pick_lane_tile(ew):
    """Feature-axis (lane) tile width: a multiple of 128 dividing Ew, else full width."""
    for cand in (512, 256, 128):
        if ew % cand == 0:
            return cand
    return ew


def add_and_normalize(input1, input2, gamma, beta):
    """input1, input2: (B, G, E). gamma, beta: (E,). Returns (B, G, E).

    Training-mode BatchNorm1d(E, affine=True) applied to
    (input1 + input2).reshape(B*G, E), stats over dim 0.
    """
    B, G, E = input1.shape
    N = B * G
    dtype = input1.dtype

    # Lane-density fold: pack R rows into the lane axis when E < 128 so the
    # last dim is a full 128 lanes (unmasked vector stores).
    R = 1
    if E < 128 and 128 % E == 0 and N % (128 // E) == 0:
        R = 128 // E
    Nw, Ew = N // R, E * R

    x1 = input1.reshape(Nw, Ew)
    x2 = input2.reshape(Nw, Ew)
    gamma_f = gamma.astype(jnp.float32).reshape(E)
    beta_f = beta.astype(jnp.float32).reshape(E)
    gamma_w = jnp.tile(gamma_f, R).reshape(1, Ew)   # folded lane layout
    beta_w = jnp.tile(beta_f, R).reshape(1, Ew)

    tE = Ew if R > 1 else _pick_lane_tile(Ew)
    grid_e = Ew // tE
    itemsize = jnp.dtype(dtype).itemsize

    # ------------------------------------------------------------------ fused
    if Nw * tE * (6 * itemsize + 8) <= _FUSED_VMEM_BUDGET:
        kernel = functools.partial(_fused_kernel, n_total=float(N), r_fold=R, e_feat=E)
        out = pl.pallas_call(
            kernel,
            out_shape=jax.ShapeDtypeStruct((Nw, Ew), dtype),
            grid=(grid_e,),
            in_specs=[
                pl.BlockSpec((Nw, tE), lambda j: (0, j)),
                pl.BlockSpec((Nw, tE), lambda j: (0, j)),
                pl.BlockSpec((1, tE), lambda j: (0, j)),
                pl.BlockSpec((1, tE), lambda j: (0, j)),
            ],
            out_specs=pl.BlockSpec((Nw, tE), lambda j: (0, j)),
            compiler_params=pltpu.CompilerParams(
                dimension_semantics=("parallel",)),
        )(x1, x2, gamma_w, beta_w)
        return out.reshape(B, G, E)

    # --------------------------------------------------------------- two-pass
    # Row tile: ~128K elements per block (~0.5 MiB f32) -> well inside VMEM
    # with double buffering on every TPU generation (incl. v7x 64 MiB).
    tN = max(8, (128 * 1024 // tE) // 8 * 8)
    tN = min(tN, Nw)
    grid_n = pl.cdiv(Nw, tN)

    # Pass 1: added = x1 + x2 ; per-column sum / sum-of-squares (f32 accumulators).
    stats_kernel = functools.partial(_add_stats_kernel, tn=tN, n_rows=Nw)
    added, col_sum, col_sumsq = pl.pallas_call(
        stats_kernel,
        out_shape=(
            jax.ShapeDtypeStruct((Nw, Ew), dtype),
            jax.ShapeDtypeStruct((1, Ew), jnp.float32),
            jax.ShapeDtypeStruct((1, Ew), jnp.float32),
        ),
        grid=(grid_e, grid_n),
        in_specs=[
            pl.BlockSpec((tN, tE), lambda e, n: (n, e)),
            pl.BlockSpec((tN, tE), lambda e, n: (n, e)),
        ],
        out_specs=(
            pl.BlockSpec((tN, tE), lambda e, n: (n, e)),
            pl.BlockSpec((1, tE), lambda e, n: (0, e)),   # resident accumulator
            pl.BlockSpec((1, tE), lambda e, n: (0, e)),   # resident accumulator
        ),
        compiler_params=pltpu.CompilerParams(
            dimension_semantics=("parallel", "arbitrary")),
    )(x1, x2)

    # Tiny (E-element) per-feature math in plain JAX: un-fold, mean/var, and
    # re-fold the resulting affine parameters back into the lane layout.
    s = col_sum.reshape(R, E).sum(axis=0)
    ss = col_sumsq.reshape(R, E).sum(axis=0)
    mean = s / N
    var = ss / N - mean * mean                       # biased variance (BN training)
    inv_std = jax.lax.rsqrt(var + EPS)
    scale = inv_std * gamma_f
    shift = beta_f - mean * scale
    scale_w = jnp.tile(scale, R).reshape(1, Ew)
    shift_w = jnp.tile(shift, R).reshape(1, Ew)

    # Pass 2: in-place affine normalize of `added` (aliased to the output).
    out = pl.pallas_call(
        _affine_kernel,
        out_shape=jax.ShapeDtypeStruct((Nw, Ew), dtype),
        grid=(grid_n, grid_e),
        in_specs=[
            pl.BlockSpec((1, tE), lambda i, j: (0, j)),
            pl.BlockSpec((1, tE), lambda i, j: (0, j)),
            pl.BlockSpec((tN, tE), lambda i, j: (i, j)),
        ],
        out_specs=pl.BlockSpec((tN, tE), lambda i, j: (i, j)),
        input_output_aliases={2: 0},
        compiler_params=pltpu.CompilerParams(
            dimension_semantics=("parallel", "parallel")),
    )(scale_w, shift_w, added)
    return out.reshape(B, G, E)


def _reference(input1, input2, gamma, beta):
    # Pure-JAX reference of training-mode BatchNorm1d on the flattened view.
    B, G, E = input1.shape
    x = (input1 + input2).reshape(B * G, E).astype(jnp.float32)
    mean = jnp.mean(x, axis=0, keepdims=True)
    var = jnp.mean((x - mean) ** 2, axis=0, keepdims=True)
    y = ((x - mean) / jnp.sqrt(var + EPS) * gamma[None, :].astype(jnp.float32)
         + beta[None, :].astype(jnp.float32))
    return y.reshape(B, G, E).astype(input1.dtype)


if __name__ == "__main__":
    key = jax.random.PRNGKey(0)
    fn = jax.jit(add_and_normalize)

    # Test 1: shipped config (embedding_dim=32, graph_size=8, batch=2).
    # Exercises the lane-density fold (E=32 -> 128 lanes) + fused kernel.
    B, G, E = 2, 8, 32
    k1, k2, k3, k4, key = jax.random.split(key, 5)
    in1 = jax.random.normal(k1, (B, G, E), dtype=jnp.float32)
    in2 = jax.random.normal(k2, (B, G, E), dtype=jnp.float32)
    gamma = jax.random.normal(k3, (E,), dtype=jnp.float32)
    beta = jax.random.normal(k4, (E,), dtype=jnp.float32)
    out = jax.block_until_ready(fn(in1, in2, gamma, beta))
    ref = _reference(in1, in2, gamma, beta)
    assert out.shape == (B, G, E)
    assert jnp.allclose(out, ref, atol=1e-4, rtol=1e-4), "small-case mismatch vs reference"

    # Test 2: larger config -> triggers the row-tiled two-pass pipeline.
    B, G, E = 64, 100, 128
    k1, k2, k3, k4, key = jax.random.split(key, 5)
    in1 = jax.random.normal(k1, (B, G, E), dtype=jnp.float32)
    in2 = jax.random.normal(k2, (B, G, E), dtype=jnp.float32)
    gamma = jax.random.normal(k3, (E,), dtype=jnp.float32)
    beta = jax.random.normal(k4, (E,), dtype=jnp.float32)
    out = jax.block_until_ready(fn(in1, in2, gamma, beta))
    ref = _reference(in1, in2, gamma, beta)
    assert out.shape == (B, G, E)
    assert jnp.allclose(out, ref, atol=2e-3, rtol=2e-3), "large-case mismatch vs reference"

    print("KERNEL_OK")
</pallas_src>

<mosaic_0001>
module attributes {stable_mosaic.version = 11 : i64} {
  func.func @_fused_kernel(%arg0: i32, %arg1: memref<4x128xf32, #tpu.memory_space<vmem>>, %arg2: memref<4x128xf32, #tpu.memory_space<vmem>>, %arg3: memref<1x128xf32, #tpu.memory_space<vmem>>, %arg4: memref<1x128xf32, #tpu.memory_space<vmem>>, %arg5: memref<4x128xf32, #tpu.memory_space<vmem>>) attributes {dimension_semantics = [#tpu.dimension_semantics<parallel>], iteration_bounds = array<i64: 1>, scalar_prefetch = 0 : i64, scratch_operands = 0 : i64, tpu.core_type = #tpu.core_type<tc>, window_params = [{transform_indices = @transform_0, window_bounds = array<i64: 4, 128>}, {transform_indices = @transform_1, window_bounds = array<i64: 4, 128>}, {transform_indices = @transform_2, window_bounds = array<i64: 1, 128>}, {transform_indices = @transform_3, window_bounds = array<i64: 1, 128>}, {transform_indices = @transform_4, window_bounds = array<i64: 4, 128>}]} {
    %c0 = arith.constant 0 : index
    %c0_0 = arith.constant 0 : index
    %0 = vector.load %arg1[%c0, %c0_0] : memref<4x128xf32, #tpu.memory_space<vmem>>, vector<4x128xf32>
    %c0_1 = arith.constant 0 : index
    %c0_2 = arith.constant 0 : index
    %1 = vector.load %arg2[%c0_1, %c0_2] : memref<4x128xf32, #tpu.memory_space<vmem>>, vector<4x128xf32>
    %2 = arith.addf %0, %1 : vector<4x128xf32>
    %cst = arith.constant 1.000000e+00 : f32
    %3 = vector.broadcast %cst : f32 to vector<1x4xf32>
    %cst_3 = arith.constant dense<0.000000e+00> : vector<1x128xf32>
    %4 = tpu.matmul %3, %2, %cst_3 {dimension_numbers = #tpu.dot_dimension_numbers<[1], [0], [0], [1], [0, 0, 1, 1], [], []>} : vector<1x4xf32>, vector<4x128xf32>, vector<1x128xf32> -> vector<1x128xf32>
    %c32_i32 = arith.constant 32 : i32
    %5 = tpu.dynamic_rotate %4 by %c32_i32 dim 1 : vector<1x128xf32>, i32 -> vector<1x128xf32>
    %6 = arith.addf %4, %5 : vector<1x128xf32>
    %c64_i32 = arith.constant 64 : i32
    %7 = tpu.dynamic_rotate %4 by %c64_i32 dim 1 : vector<1x128xf32>, i32 -> vector<1x128xf32>
    %8 = arith.addf %6, %7 : vector<1x128xf32>
    %c96_i32 = arith.constant 96 : i32
    %9 = tpu.dynamic_rotate %4 by %c96_i32 dim 1 : vector<1x128xf32>, i32 -> vector<1x128xf32>
    %10 = arith.addf %8, %9 : vector<1x128xf32>
    %cst_4 = arith.constant 6.250000e-02 : f32
    %11 = vector.broadcast %cst_4 : f32 to vector<1x128xf32>
    %12 = arith.mulf %10, %11 : vector<1x128xf32>
    %13 = vector.broadcast %12 : vector<1x128xf32> to vector<4x128xf32>
    %14 = arith.subf %2, %13 : vector<4x128xf32>
    %15 = arith.mulf %14, %14 : vector<4x128xf32>
    %cst_5 = arith.constant dense<0.000000e+00> : vector<1x128xf32>
    %16 = tpu.matmul %3, %15, %cst_5 {dimension_numbers = #tpu.dot_dimension_numbers<[1], [0], [0], [1], [0, 0, 1, 1], [], []>} : vector<1x4xf32>, vector<4x128xf32>, vector<1x128xf32> -> vector<1x128xf32>
    %c32_i32_6 = arith.constant 32 : i32
    %17 = tpu.dynamic_rotate %16 by %c32_i32_6 dim 1 : vector<1x128xf32>, i32 -> vector<1x128xf32>
    %18 = arith.addf %16, %17 : vector<1x128xf32>
    %c64_i32_7 = arith.constant 64 : i32
    %19 = tpu.dynamic_rotate %16 by %c64_i32_7 dim 1 : vector<1x128xf32>, i32 -> vector<1x128xf32>
    %20 = arith.addf %18, %19 : vector<1x128xf32>
    %c96_i32_8 = arith.constant 96 : i32
    %21 = tpu.dynamic_rotate %16 by %c96_i32_8 dim 1 : vector<1x128xf32>, i32 -> vector<1x128xf32>
    %22 = arith.addf %20, %21 : vector<1x128xf32>
    %cst_9 = arith.constant 6.250000e-02 : f32
    %23 = vector.broadcast %cst_9 : f32 to vector<1x128xf32>
    %24 = arith.mulf %22, %23 : vector<1x128xf32>
    %cst_10 = arith.constant 9.99999974E-6 : f32
    %25 = vector.broadcast %cst_10 : f32 to vector<1x128xf32>
    %26 = arith.addf %24, %25 : vector<1x128xf32>
    %27 = math.rsqrt %26 : vector<1x128xf32>
    %c0_11 = arith.constant 0 : index
    %c0_12 = arith.constant 0 : index
    %28 = vector.load %arg3[%c0_11, %c0_12] : memref<1x128xf32, #tpu.memory_space<vmem>>, vector<1x128xf32>
    %29 = arith.mulf %27, %28 : vector<1x128xf32>
    %30 = vector.broadcast %29 : vector<1x128xf32> to vector<4x128xf32>
    %31 = arith.mulf %14, %30 : vector<4x128xf32>
    %c0_13 = arith.constant 0 : index
    %c0_14 = arith.constant 0 : index
    %32 = vector.load %arg4[%c0_13, %c0_14] : memref<1x128xf32, #tpu.memory_space<vmem>>, vector<1x128xf32>
    %33 = vector.broadcast %32 : vector<1x128xf32> to vector<4x128xf32>
    %34 = arith.addf %31, %33 : vector<4x128xf32>
    %c0_15 = arith.constant 0 : index
    %c0_16 = arith.constant 0 : index
    %35 = vector.load %arg5[%c0_15, %c0_16] : memref<4x128xf32, #tpu.memory_space<vmem>>, vector<4x128xf32>
    tpu.vector_store %arg5[%c0_15, %c0_16], %34 {strides = array<i32>} : memref<4x128xf32, #tpu.memory_space<vmem>>, vector<4x128xf32>,
    return
  }
  func.func @transform_0(%arg0: i32) -> (i32, i32) {
    %c0_i32 = arith.constant 0 : i32
    %c0_i32_0 = arith.constant 0 : i32
    return %c0_i32, %arg0 : i32, i32
  }
  func.func @transform_1(%arg0: i32) -> (i32, i32) {
    %c0_i32 = arith.constant 0 : i32
    %c0_i32_0 = arith.constant 0 : i32
    return %c0_i32, %arg0 : i32, i32
  }
  func.func @transform_2(%arg0: i32) -> (i32, i32) {
    %c0_i32 = arith.constant 0 : i32
    %c0_i32_0 = arith.constant 0 : i32
    return %c0_i32, %arg0 : i32, i32
  }
  func.func @transform_3(%arg0: i32) -> (i32, i32) {
    %c0_i32 = arith.constant 0 : i32
    %c0_i32_0 = arith.constant 0 : i32
    return %c0_i32, %arg0 : i32, i32
  }
  func.func @transform_4(%arg0: i32) -> (i32, i32) {
    %c0_i32 = arith.constant 0 : i32
    %c0_i32_0 = arith.constant 0 : i32
    return %c0_i32, %arg0 : i32, i32
  }
}

</mosaic_0001>

<bundles_post_ra>
// kernel: tile.14
= control target key start
LH: loop header
LB: loop body
LE: loop exit
PB: predicated region body
PF: predicated region fallthrough
CT: control target
= control target key end

     0   :  { %vm8_vm0 = vcmask 261120   ;;  %s40_s8 = smov 32   ;;  %s41_s9 = smov 64   ;;  %vm14_vm1 = vcmask 1048320   ;;  %vm20_vm2 = vcmask 785920   ;;  %vm26_vm3 = vcmask 523520   ;;  %s58_s0 = inlined_call_operand.vmem [shape: f32[4,32], index: 0, kind: input, shape index: {}]   ;;  %s59_s1 = inlined_call_operand.vmem [shape: f32[1,128], index: 1, kind: output, shape index: {}]  }
   0x1   :  { %v5_v0 = vld [vmem:[%s58_s0] sm:$0xf]  ;;  %s39_s0 = smov 96  }
   0x2   :  { %6 = vst [vmem:[#allocation1] sm:$0xf] %v5_v0 }
   0x9   :  { %v11_v1 = vld [vmem:[#allocation1 + $0x3] sm:$0x1]   ;;  %v23_v2 = vld [vmem:[#allocation1 + $0x1] sm:$0x1]   ;;  %v7_v3 = vld [vmem:[#allocation1] sm:$0x1]  }
   0xa   :  { %12 = vrot.lane.b32.xlu0 %v11_v1, %s39_s0  ;;  %24 = vrot.lane.b32.xlu1 %v23_v2, %s40_s8  ;;  %v17_v4 = vld [vmem:[#allocation1 + $0x2] sm:$0x1]   ;;  %9 = vst.msk [vmem:[#allocation0] sm:$0x1] %vm8_vm0, %v7_v3  }
   0xe   :  { %18 = vrot.lane.b32.xlu0 %v17_v4, %s41_s9 }
  0x7c   :  { %v13_v5 = vpop.permute.xlu0 %12   ;;  %v25_v6 = vpop.permute.xlu1 %24  }
  0x7d   :  { %15 = vst.msk [vmem:[#allocation0] sm:$0x1] %vm14_vm1, %v13_v5  }
  0x80   :  { %v19_v7 = vpop.permute.xlu0 %18  }
  0x81   :  { %21 = vst.msk [vmem:[#allocation0] sm:$0x1] %vm20_vm2, %v19_v7  }
  0x82   :  { %27 = vst.msk [vmem:[#allocation0] sm:$0x1] %vm26_vm3, %v25_v6  }
  0x89   :  { %v32_v8 = vld [vmem:[#allocation0] sm:$0x1] }
  0x8a   :  { %35 = vst [vmem:[%s59_s1] sm:$0x1] %v32_v8 }

// kernel: tile.13
= control target key start
LH: loop header
LB: loop body
LE: loop exit
PB: predicated region body
PF: predicated region fallthrough
CT: control target
= control target key end

     0   :  { %s22_s0 = inlined_call_operand.vmem [shape: f32[32], index: 0, kind: input, shape index: {}]   ;;  %s23_s1 = inlined_call_operand.vmem [shape: f32[4,32], index: 1, kind: output, shape index: {}]  }
   0x1   :  { %v4_v0 = vld [vmem:[%s22_s0] ss:$0 sm:$0xff] }
   0x2   :  { %5 = vst [vmem:[%s23_s1] sm:$0xf] %v4_v0 }

</bundles_post_ra>
